<compile_context>
chip_gen: v5e
topology: v5e:2x2
jax: 0.10.0
libtpu: 0.0.40
codegen_flags: <defaults>
</compile_context>

<pallas_src>
import jax
import jax.numpy as jnp
from jax.experimental import pallas as pl
from jax.experimental.pallas import tpu as pltpu


def classifier_kernel(x_ref, w1_ref, b1_ref, w2_ref, b2_ref, o_ref):
    # lin1 + ReLU (f32 accumulation on the MXU)
    h = jnp.dot(x_ref[...], w1_ref[...], preferred_element_type=jnp.float32)
    h = jnp.maximum(h + b1_ref[...], 0.0)          # [tm, H4] + [1, H4] broadcast
    # lin2 + sigmoid
    z = jnp.dot(h, w2_ref[...], preferred_element_type=jnp.float32)
    z = z + b2_ref[...]                            # [tm, O] + [1, O] broadcast
    o_ref[...] = jax.nn.sigmoid(z).astype(o_ref.dtype)


def _round_up(v, m):
    return ((v + m - 1) // m) * m


def _choose_tm(n_rows, max_tm=1024):
    """Pick the row tile: as large as sensible (multiple of 8, capped at
    max_tm).  When the whole problem would fit one tile, split into ~2 tiles
    so the "parallel" grid axis can shard across v7x's two TensorCores."""
    n_pad = _round_up(n_rows, 8)
    if n_pad <= 16:                       # trivially small: 1-2 tiles of 8 rows
        return 8
    if n_pad <= max_tm:
        return max(8, _round_up(pl.cdiv(n_rows, 2), 8))
    return max_tm


def classifier_forward(x, w1, b1, w2, b2, *, tm=None):
    """x: [N, H] float32. Returns sigmoid(relu(x@w1+b1)@w2+b2) as [N, O] f32."""
    N, H = x.shape
    H4 = w1.shape[1]
    O = w2.shape[1]

    if tm is None:
        tm = _choose_tm(N)
    grid = (pl.cdiv(N, tm),)   # masked tail: OOB rows of the last tile dropped

    x = x.astype(jnp.float32)
    w1 = w1.astype(jnp.float32)
    b1 = b1.astype(jnp.float32)
    w2 = w2.astype(jnp.float32)
    b2 = b2.astype(jnp.float32)

    return pl.pallas_call(
        classifier_kernel,
        out_shape=jax.ShapeDtypeStruct((N, O), jnp.float32),
        grid_spec=pltpu.PrefetchScalarGridSpec(
            num_scalar_prefetch=0,
            grid=grid,
            in_specs=[
                pl.BlockSpec((tm, H), lambda i: (i, 0)),   # x rows (streamed)
                pl.BlockSpec((H, H4), lambda i: (0, 0)),   # W1 (resident)
                pl.BlockSpec((1, H4), lambda i: (0, 0)),   # b1 (resident)
                pl.BlockSpec((H4, O), lambda i: (0, 0)),   # W2 (resident)
                pl.BlockSpec((1, O), lambda i: (0, 0)),    # b2 (resident)
            ],
            out_specs=pl.BlockSpec((tm, O), lambda i: (i, 0)),
        ),
        compiler_params=pltpu.CompilerParams(
            dimension_semantics=("parallel",)),  # shards grid across TCs on v7x
    )(x, w1, b1, w2, b2)


def reference_forward(x, w1, b1, w2, b2):
    h = jnp.maximum(x @ w1 + b1, 0.0)
    return jax.nn.sigmoid(h @ w2 + b2)


if __name__ == "__main__":
    hidden_channels = 32
    out_channels = 4
    N = 16  # number of "book" nodes

    key = jax.random.PRNGKey(0)
    k_x, k_w1, k_b1, k_w2, k_b2 = jax.random.split(key, 5)

    h4 = hidden_channels // 4
    x = jax.random.normal(k_x, (N, hidden_channels), dtype=jnp.float32)
    # Deterministic params (Linear shapes from the module's __init__),
    # stored pre-transposed as [in, out] for the kernel.
    w1 = 0.1 * jax.random.normal(k_w1, (hidden_channels, h4), dtype=jnp.float32)
    b1 = 0.1 * jax.random.normal(k_b1, (1, h4), dtype=jnp.float32)
    w2 = 0.1 * jax.random.normal(k_w2, (h4, out_channels), dtype=jnp.float32)
    b2 = 0.1 * jax.random.normal(k_b2, (1, out_channels), dtype=jnp.float32)

    out = jax.block_until_ready(classifier_forward(x, w1, b1, w2, b2))
    ref = reference_forward(x, w1, b1, w2, b2)
    assert out.shape == (N, out_channels)
    assert jnp.allclose(out, ref, atol=1e-5, rtol=1e-5), "mismatch vs reference"

    # Non-divisible N path (cdiv grid + dropped OOB tail rows).
    N2 = 20
    x2 = jax.random.normal(jax.random.PRNGKey(1), (N2, hidden_channels),
                           dtype=jnp.float32)
    out2 = jax.block_until_ready(classifier_forward(x2, w1, b1, w2, b2))
    ref2 = reference_forward(x2, w1, b1, w2, b2)
    assert out2.shape == (N2, out_channels)
    assert jnp.allclose(out2, ref2, atol=1e-5, rtol=1e-5), "mismatch (tail case)"

    print("KERNEL_OK")
</pallas_src>

<mosaic_0001>
module attributes {stable_mosaic.version = 11 : i64} {
  func.func @classifier_kernel(%arg0: i32, %arg1: memref<8x32xf32, #tpu.memory_space<vmem>>, %arg2: memref<32x8xf32, #tpu.memory_space<vmem>>, %arg3: memref<1x8xf32, #tpu.memory_space<vmem>>, %arg4: memref<8x4xf32, #tpu.memory_space<vmem>>, %arg5: memref<1x4xf32, #tpu.memory_space<vmem>>, %arg6: memref<8x4xf32, #tpu.memory_space<vmem>>) attributes {dimension_semantics = [#tpu.dimension_semantics<parallel>], iteration_bounds = array<i64: 2>, scalar_prefetch = 0 : i64, scratch_operands = 0 : i64, tpu.core_type = #tpu.core_type<tc>, window_params = [{transform_indices = @transform_0, window_bounds = array<i64: 8, 32>}, {pipeline_mode = #tpu.pipeline_mode<synchronous>, transform_indices = @transform_1, window_bounds = array<i64: 32, 8>}, {pipeline_mode = #tpu.pipeline_mode<synchronous>, transform_indices = @transform_2, window_bounds = array<i64: 1, 8>}, {pipeline_mode = #tpu.pipeline_mode<synchronous>, transform_indices = @transform_3, window_bounds = array<i64: 8, 4>}, {pipeline_mode = #tpu.pipeline_mode<synchronous>, transform_indices = @transform_4, window_bounds = array<i64: 1, 4>}, {transform_indices = @transform_5, window_bounds = array<i64: 8, 4>}]} {
    %c0 = arith.constant 0 : index
    %c0_0 = arith.constant 0 : index
    %0 = vector.load %arg1[%c0, %c0_0] : memref<8x32xf32, #tpu.memory_space<vmem>>, vector<8x32xf32>
    %c0_1 = arith.constant 0 : index
    %c0_2 = arith.constant 0 : index
    %1 = vector.load %arg2[%c0_1, %c0_2] : memref<32x8xf32, #tpu.memory_space<vmem>>, vector<32x8xf32>
    %cst = arith.constant dense<0.000000e+00> : vector<8x8xf32>
    %2 = tpu.matmul %0, %1, %cst {dimension_numbers = #tpu.dot_dimension_numbers<[1], [0], [0], [1], [0, 0, 1, 1], [], []>} : vector<8x32xf32>, vector<32x8xf32>, vector<8x8xf32> -> vector<8x8xf32>
    %c0_3 = arith.constant 0 : index
    %c0_4 = arith.constant 0 : index
    %3 = vector.load %arg3[%c0_3, %c0_4] : memref<1x8xf32, #tpu.memory_space<vmem>>, vector<1x8xf32>
    %4 = vector.broadcast %3 : vector<1x8xf32> to vector<8x8xf32>
    %5 = arith.addf %2, %4 : vector<8x8xf32>
    %cst_5 = arith.constant 0.000000e+00 : f32
    %6 = vector.broadcast %cst_5 : f32 to vector<8x8xf32>
    %7 = arith.maximumf %5, %6 : vector<8x8xf32>
    %c0_6 = arith.constant 0 : index
    %c0_7 = arith.constant 0 : index
    %8 = vector.load %arg4[%c0_6, %c0_7] : memref<8x4xf32, #tpu.memory_space<vmem>>, vector<8x4xf32>
    %cst_8 = arith.constant dense<0.000000e+00> : vector<8x4xf32>
    %9 = tpu.matmul %7, %8, %cst_8 {dimension_numbers = #tpu.dot_dimension_numbers<[1], [0], [0], [1], [0, 0, 1, 1], [], []>} : vector<8x8xf32>, vector<8x4xf32>, vector<8x4xf32> -> vector<8x4xf32>
    %c0_9 = arith.constant 0 : index
    %c0_10 = arith.constant 0 : index
    %10 = vector.load %arg5[%c0_9, %c0_10] : memref<1x4xf32, #tpu.memory_space<vmem>>, vector<1x4xf32>
    %11 = vector.broadcast %10 : vector<1x4xf32> to vector<8x4xf32>
    %12 = arith.addf %9, %11 : vector<8x4xf32>
    %13 = arith.negf %12 : vector<8x4xf32>
    %14 = math.exp %13 : vector<8x4xf32>
    %cst_11 = arith.constant 1.000000e+00 : f32
    %15 = vector.broadcast %cst_11 : f32 to vector<8x4xf32>
    %16 = arith.addf %15, %14 : vector<8x4xf32>
    %17 = arith.divf %15, %16 : vector<8x4xf32>
    %c0_12 = arith.constant 0 : index
    %c0_13 = arith.constant 0 : index
    %18 = vector.load %arg6[%c0_12, %c0_13] : memref<8x4xf32, #tpu.memory_space<vmem>>, vector<8x4xf32>
    tpu.vector_store %arg6[%c0_12, %c0_13], %17 {strides = array<i32>} : memref<8x4xf32, #tpu.memory_space<vmem>>, vector<8x4xf32>,
    return
  }
  func.func @transform_0(%arg0: i32) -> (i32, i32) {
    %c0_i32 = arith.constant 0 : i32
    %c0_i32_0 = arith.constant 0 : i32
    return %arg0, %c0_i32 : i32, i32
  }
  func.func @transform_1(%arg0: i32) -> (i32, i32) {
    %c0_i32 = arith.constant 0 : i32
    %c0_i32_0 = arith.constant 0 : i32
    %c0_i32_1 = arith.constant 0 : i32
    return %c0_i32, %c0_i32_0 : i32, i32
  }
  func.func @transform_2(%arg0: i32) -> (i32, i32) {
    %c0_i32 = arith.constant 0 : i32
    %c0_i32_0 = arith.constant 0 : i32
    %c0_i32_1 = arith.constant 0 : i32
    return %c0_i32, %c0_i32_0 : i32, i32
  }
  func.func @transform_3(%arg0: i32) -> (i32, i32) {
    %c0_i32 = arith.constant 0 : i32
    %c0_i32_0 = arith.constant 0 : i32
    %c0_i32_1 = arith.constant 0 : i32
    return %c0_i32, %c0_i32_0 : i32, i32
  }
  func.func @transform_4(%arg0: i32) -> (i32, i32) {
    %c0_i32 = arith.constant 0 : i32
    %c0_i32_0 = arith.constant 0 : i32
    %c0_i32_1 = arith.constant 0 : i32
    return %c0_i32, %c0_i32_0 : i32, i32
  }
  func.func @transform_5(%arg0: i32) -> (i32, i32) {
    %c0_i32 = arith.constant 0 : i32
    %c0_i32_0 = arith.constant 0 : i32
    return %arg0, %c0_i32 : i32, i32
  }
}

</mosaic_0001>

<bundles_post_ra>
// kernel: tpu_custom_call.1
= control target key start
LH: loop header
LB: loop body
LE: loop exit
PB: predicated region body
PF: predicated region fallthrough
CT: control target
= control target key end

     0   :  { %s421_s18 = smov 0   ;;  %s466_s0 = inlined_call_operand.vmem [shape: f32[16,32], index: 0, kind: input, shape index: {}]   ;;  %s467_s1 = inlined_call_operand.vmem [shape: f32[32,8], index: 1, kind: input, shape index: {}]   ;;  %s468_s2 = inlined_call_operand.vmem [shape: f32[1,8], index: 2, kind: input, shape index: {}]   ;;  %s469_s3 = inlined_call_operand.vmem [shape: f32[8,4], index: 3, kind: input, shape index: {}]   ;;  %s470_s4 = inlined_call_operand.vmem [shape: f32[1,4], index: 4, kind: input, shape index: {}]   ;;  %s471_s5 = inlined_call_operand.vmem [shape: f32[16,4], index: 5, kind: output, shape index: {}]  }
   0x1 LB: > { %s357_s19 = sadd.s32 4294967295, %s389_s18   ;;  %p361_p0 = scmp.ge.s32.totalorder %s389_s18, 1  ;;  %s389_s18 = sphi %s421_s18, %s15_s18  }
   0x2   : > { %p186_p1 = scmp.lt.s32.totalorder %s389_s18, 3 }
   0x4   : > { %p187_p2 = pnand %p361_p0, %p186_p1 }
   0x5   : > { %p212_p3 = scmp.lt.s32.totalorder (!%p187_p2), %s357_s19, 1 }
   0x6   : > { %190 = sbr.rel (%p187_p2) target bundleno = 306 (0x132), region = 40 }
   0xb   : > { %v224_v0 = vld [vmem:[%s467_s1 + $0x18] sm:$0xff]  ;;  %v223_v1 = vld [vmem:[%s467_s1 + $0x10] sm:$0xff]  ;;  %v222_v2 = vld [vmem:[%s467_s1 + $0x8] sm:$0xff]  ;;  %s473_s19 = smov (!%p212_p3, %s357_s19), 1  ;;  %vm229_vm0 = vcmask 261120   ;;  %vm259_vm1 = vcmask 64512  }
   0xc   : > { %245 = vmatpush.msra.mxu0 %v224_v0  ;;  %v221_v3 = vld [vmem:[%s467_s1] sm:$0xff]  ;;  %s362_s28 = sshll.u32 %s473_s19, 3  ;;  %vm302_vm5 = vcmask 31744  }
   0xd   : > { %s215_s6 = scalar_lea.vmem %s466_s0, %s362_s28  ;;  %v254_v5 = vld [vmem:[%s469_s3] sm:$0xff]  ;;  %s219_s15 = scalar_lea.vmem %s471_s5, %s362_s28 }
   0xe   : > { %246 = vmatpush.msra.mxu0 %v223_v1  ;;  %v220_v4 = vld [vmem:[%s215_s6] sm:$0xff]  ;;  %278 = vmatpush.msra.mxu1 %v254_v5 }
   0xf   : > { %v377_v6 = vld [vmem:[%s468_s2] ss:$0 sm:$0xff] }
  0x10   : > { %247 = vmatpush.msra.mxu0 %v222_v2  ;;  %v378_v10 = vld [vmem:[%s470_s4] ss:$0 sm:$0xff] }
  0x12   : > { %248 = vmatpush.msra.mxu0 %v221_v3 }
  0x13   : > { %364 = vmatmul.msk.f32.vlgmr.msra.gmra.mxu0 %vm229_vm0, %v220_v4 }
  0x90   : > { %v250_v7 = vpop.f32.mrf.mxu0 }
  0x91   : > { %v251_v8 = vadd.f32 %v377_v6, %v250_v7 }
  0x93   : > { %v253_v9 = vmax.f32 %v251_v8, 0.0 }
  0x95   : > { %365 = vmatmul.msk.f32.vlgmr.msra.gmra.mxu1 %vm259_vm1, %v253_v9 }
 0x112   : > { %v280_v11 = vpop.f32.mrf.mxu1 }
 0x113   : > { %v281_v12 = vadd.f32 %v378_v10, %v280_v11 }
 0x115   : > { %v366_v13 = vmul.f32 -1.442695, %v281_v12 }
 0x117   : > { %379 = vpow2.f32 %v366_v13 }
 0x11d   : > { %v380_v14 = vpop.eup %379 }
 0x11e   : > { %v286_v15 = vadd.f32 1.0, %v380_v14 }
 0x120   : > { %381 = vrcp.f32 %v286_v15  ;;  %v298_v19 = vand.u32 2147483648, %v286_v15  ;;  %v296_v21 = vand.u32 2147483647, %v286_v15  ;;  %vm292_vm3 = vweird.f32 %v286_v15 }
 0x122   : > { %v299_v23 = vor.u32 1.1754944e-38, %v298_v19  ;;  %vm297_vm6 = vcmp.eq.f32.partialorder %v296_v21, 8.507059e+37 }
 0x126   : > { %v382_v16 = vpop.eup %381 }
 0x127   : > { %v288_v17 = vmul.f32 %v382_v16, %v286_v15  ;;  %vm293_vm2 = vweird.f32 %v382_v16 }
 0x128   : > { %vm294_vm4 = vmor %vm292_vm3, %vm293_vm2 }
 0x129   : > { %v289_v18 = vsub.f32 1.0, %v288_v17 }
 0x12b   : > { %v290_v20 = vmul.f32 %v382_v16, %v289_v18 }
 0x12d   : > { %v291_v22 = vadd.f32 %v382_v16, %v290_v20 }
 0x12f   : > { %v295_v24 = vsel %vm294_vm4, %v382_v16, %v291_v22 }
 0x130   : > { %v300_v25 = vsel %vm297_vm6, %v299_v23, %v295_v24 }
 0x131   : > { %303 = vst.msk [vmem:[%s219_s15] sm:$0xff] %vm302_vm5, %v300_v25 }
 0x132 PF: > { %s15_s18 = sadd.s32 1, %s389_s18  }
 0x133   : > { %p12_p4 = scmp.ge.s32.totalorder %s15_s18, 4  }
 0x135   :  { %14 = sbr.rel (!%p12_p4) target bundleno = 1 (0x1), region = 70 }

</bundles_post_ra>
